<compile_context>
chip_gen: v6e
topology: v6e:2x2x1
jax: 0.10.0
libtpu: 0.0.40
codegen_flags: <defaults>
</compile_context>

<pallas_src>
import jax
import jax.numpy as jnp
from jax.experimental import pallas as pl
from jax.experimental.pallas import tpu as pltpu

_SQRT_HALF = 0.7071067811865476


def _erf_poly(x):
    # Abramowitz & Stegun 7.1.26 polynomial approximation (|err| < 1.5e-7).
    # Guarantees Mosaic lowering; the single exp() goes to the EUP slot, the
    # polynomial is a handful of VALU ops -> negligible next to the matmuls.
    a1, a2, a3, a4, a5 = 0.254829592, -0.284496736, 1.421413741, -1.453152027, 1.061405429
    p = 0.3275911
    z = jnp.abs(x)
    t = 1.0 / (1.0 + p * z)
    poly = ((((a5 * t + a4) * t + a3) * t + a2) * t + a1) * t
    y = 1.0 - poly * jnp.exp(-z * z)
    return jnp.where(x >= 0, y, -y)


def _gelu_exact(x):
    # torch.nn.GELU() default (erf formulation)
    return 0.5 * x * (1.0 + _erf_poly(x * _SQRT_HALF))


# --------------------------- fused ConvMlp kernel -----------------------------
def convmlp_kernel(x_ref, w1_ref, b1_ref, w2_ref, b2_ref, o_ref):
    # x_ref : (1, Cin, TN)   -- spatial on lanes (lane-dense)
    # w1    : (hidden, Cin)   b1 : (hidden, 1)
    # w2    : (Cout, hidden)  b2 : (Cout, 1)
    x = x_ref[0]                                                     # (Cin, TN)
    h = jnp.dot(w1_ref[...], x, preferred_element_type=jnp.float32)  # (hidden, TN)
    h = _gelu_exact(h + b1_ref[...])
    y = jnp.dot(w2_ref[...], h, preferred_element_type=jnp.float32)  # (Cout, TN)
    y = y + b2_ref[...]
    o_ref[0] = y.astype(o_ref.dtype)


def _round_up(n, m):
    return ((n + m - 1) // m) * m


def conv_mlp_forward(x_nchw, params, *, col_tile=2048):
    """ConvMlp forward pass (NCHW in, NCHW out).

    params:
        w1 : (hidden, Cin)   == fc1.weight[:, :, 0, 0]
        b1 : (hidden, 1)     == fc1.bias[:, None]
        w2 : (Cout, hidden)  == fc2.weight[:, :, 0, 0]
        b2 : (Cout, 1)       == fc2.bias[:, None]
    """
    B, Cin, H, W = x_nchw.shape
    hidden, cin_w = params["w1"].shape
    Cout = params["w2"].shape[0]
    assert cin_w == Cin

    HW = H * W
    x3 = x_nchw.reshape(B, Cin, HW).astype(jnp.float32)

    # Spatial (lane) tiling: one big lane-dense tile per grid step.
    if HW <= col_tile:
        TN = HW                      # full-extent block (allowed even if % 128 != 0)
        HWp = HW
    else:
        TN = col_tile                # multiple of 128
        HWp = _round_up(HW, TN)
    if HWp != HW:
        x3 = jnp.pad(x3, ((0, 0), (0, 0), (0, HWp - HW)))

    grid = (B, HWp // TN)
    full2d = lambda shape: pl.BlockSpec(shape, lambda b, j: (0, 0))

    flops = 2 * B * HWp * (Cin * hidden + hidden * Cout)
    bytes_accessed = 4 * (B * HWp * (Cin + Cout)
                          + Cin * hidden + hidden * Cout + hidden + Cout)
    cost = pl.CostEstimate(flops=flops,
                           transcendentals=B * HWp * hidden,
                           bytes_accessed=bytes_accessed)

    out3 = pl.pallas_call(
        convmlp_kernel,
        out_shape=jax.ShapeDtypeStruct((B, Cout, HWp), jnp.float32),
        grid=grid,
        in_specs=[
            pl.BlockSpec((1, Cin, TN), lambda b, j: (b, 0, j)),
            full2d((hidden, Cin)),
            full2d((hidden, 1)),
            full2d((Cout, hidden)),
            full2d((Cout, 1)),
        ],
        out_specs=pl.BlockSpec((1, Cout, TN), lambda b, j: (b, 0, j)),
        compiler_params=pltpu.CompilerParams(
            dimension_semantics=("parallel", "parallel"),
        ),
        cost_estimate=cost,
    )(x3, params["w1"], params["b1"], params["w2"], params["b2"])

    if HWp != HW:
        out3 = out3[:, :, :HW]
    return out3.reshape(B, Cout, H, W)


# ---------------------- pure-JAX reference (for checking) ---------------------
def conv_mlp_reference(x_nchw, params):
    x = x_nchw.astype(jnp.float32)
    h = jnp.einsum("oc,bchw->bohw", params["w1"], x,
                   precision="highest") + params["b1"].reshape(1, -1, 1, 1)
    h = jax.nn.gelu(h, approximate=False)          # erf GELU == torch.nn.GELU()
    y = jnp.einsum("oc,bchw->bohw", params["w2"], h,
                   precision="highest") + params["b2"].reshape(1, -1, 1, 1)
    return y


if __name__ == "__main__":
    key = jax.random.PRNGKey(0)
    ks = jax.random.split(key, 6)

    # Small shapes consistent with the module: in=out=4 channels, hidden=32.
    B, Cin, H, W = 2, 4, 16, 16
    hidden = 32
    Cout = Cin                                    # out_features defaults to in_features

    params = {
        "w1": jax.random.normal(ks[0], (hidden, Cin), jnp.float32) * 0.2,
        "b1": jax.random.normal(ks[1], (hidden, 1), jnp.float32) * 0.05,
        "w2": jax.random.normal(ks[2], (Cout, hidden), jnp.float32) * 0.2,
        "b2": jax.random.normal(ks[3], (Cout, 1), jnp.float32) * 0.05,
    }

    x = jax.random.normal(ks[4], (B, Cin, H, W), jnp.float32)

    out = jax.jit(conv_mlp_forward)(x, params)
    out = jax.block_until_ready(out)
    assert out.shape == (B, Cout, H, W)

    ref = conv_mlp_reference(x, params)
    err = float(jnp.max(jnp.abs(out - ref)))
    assert err < 5e-3, f"max abs error too large: {err}"

    print("KERNEL_OK")
</pallas_src>

<mosaic_0001>
module attributes {stable_mosaic.version = 11 : i64} {
  func.func @convmlp_kernel(%arg0: i32, %arg1: i32, %arg2: memref<1x4x256xf32, #tpu.memory_space<vmem>>, %arg3: memref<32x4xf32, #tpu.memory_space<vmem>>, %arg4: memref<32x1xf32, #tpu.memory_space<vmem>>, %arg5: memref<4x32xf32, #tpu.memory_space<vmem>>, %arg6: memref<4x1xf32, #tpu.memory_space<vmem>>, %arg7: memref<1x4x256xf32, #tpu.memory_space<vmem>>) attributes {dimension_semantics = [#tpu.dimension_semantics<parallel>, #tpu.dimension_semantics<parallel>], iteration_bounds = array<i64: 2, 1>, scalar_prefetch = 0 : i64, scratch_operands = 0 : i64, tpu.core_type = #tpu.core_type<tc>, window_params = [{transform_indices = @transform_0, window_bounds = array<i64: 1, 4, 256>}, {pipeline_mode = #tpu.pipeline_mode<synchronous>, transform_indices = @transform_1, window_bounds = array<i64: 32, 4>}, {pipeline_mode = #tpu.pipeline_mode<synchronous>, transform_indices = @transform_2, window_bounds = array<i64: 32, 1>}, {pipeline_mode = #tpu.pipeline_mode<synchronous>, transform_indices = @transform_3, window_bounds = array<i64: 4, 32>}, {pipeline_mode = #tpu.pipeline_mode<synchronous>, transform_indices = @transform_4, window_bounds = array<i64: 4, 1>}, {transform_indices = @transform_5, window_bounds = array<i64: 1, 4, 256>}]} {
    %c0 = arith.constant 0 : index
    %c0_0 = arith.constant 0 : index
    %c0_1 = arith.constant 0 : index
    %0 = vector.load %arg2[%c0, %c0_0, %c0_1] : memref<1x4x256xf32, #tpu.memory_space<vmem>>, vector<1x4x256xf32>
    %1 = vector.shape_cast %0 : vector<1x4x256xf32> to vector<4x256xf32>
    %c0_2 = arith.constant 0 : index
    %c0_3 = arith.constant 0 : index
    %2 = vector.load %arg3[%c0_2, %c0_3] : memref<32x4xf32, #tpu.memory_space<vmem>>, vector<32x4xf32>
    %cst = arith.constant dense<0.000000e+00> : vector<32x256xf32>
    %3 = tpu.matmul %2, %1, %cst {dimension_numbers = #tpu.dot_dimension_numbers<[1], [0], [0], [1], [0, 0, 1, 1], [], []>} : vector<32x4xf32>, vector<4x256xf32>, vector<32x256xf32> -> vector<32x256xf32>
    %c0_4 = arith.constant 0 : index
    %c0_5 = arith.constant 0 : index
    %4 = vector.load %arg4[%c0_4, %c0_5] : memref<32x1xf32, #tpu.memory_space<vmem>>, vector<32x1xf32>
    %5 = vector.broadcast %4 : vector<32x1xf32> to vector<32x256xf32>
    %6 = arith.addf %3, %5 : vector<32x256xf32>
    %cst_6 = arith.constant 5.000000e-01 : f32
    %7 = vector.broadcast %cst_6 : f32 to vector<32x256xf32>
    %8 = arith.mulf %7, %6 : vector<32x256xf32>
    %cst_7 = arith.constant 0.707106769 : f32
    %9 = vector.broadcast %cst_7 : f32 to vector<32x256xf32>
    %10 = arith.mulf %6, %9 : vector<32x256xf32>
    %11 = math.absf %10 : vector<32x256xf32>
    %cst_8 = arith.constant 0.327591091 : f32
    %12 = vector.broadcast %cst_8 : f32 to vector<32x256xf32>
    %13 = arith.mulf %12, %11 : vector<32x256xf32>
    %cst_9 = arith.constant 1.000000e+00 : f32
    %14 = vector.broadcast %cst_9 : f32 to vector<32x256xf32>
    %15 = arith.addf %14, %13 : vector<32x256xf32>
    %cst_10 = arith.constant 1.000000e+00 : f32
    %16 = vector.broadcast %cst_10 : f32 to vector<32x256xf32>
    %17 = arith.divf %16, %15 : vector<32x256xf32>
    %cst_11 = arith.constant 1.06140542 : f32
    %18 = vector.broadcast %cst_11 : f32 to vector<32x256xf32>
    %19 = arith.mulf %18, %17 : vector<32x256xf32>
    %cst_12 = arith.constant -1.45315206 : f32
    %20 = vector.broadcast %cst_12 : f32 to vector<32x256xf32>
    %21 = arith.addf %19, %20 : vector<32x256xf32>
    %22 = arith.mulf %21, %17 : vector<32x256xf32>
    %cst_13 = arith.constant 1.42141378 : f32
    %23 = vector.broadcast %cst_13 : f32 to vector<32x256xf32>
    %24 = arith.addf %22, %23 : vector<32x256xf32>
    %25 = arith.mulf %24, %17 : vector<32x256xf32>
    %cst_14 = arith.constant -0.284496725 : f32
    %26 = vector.broadcast %cst_14 : f32 to vector<32x256xf32>
    %27 = arith.addf %25, %26 : vector<32x256xf32>
    %28 = arith.mulf %27, %17 : vector<32x256xf32>
    %cst_15 = arith.constant 0.254829586 : f32
    %29 = vector.broadcast %cst_15 : f32 to vector<32x256xf32>
    %30 = arith.addf %28, %29 : vector<32x256xf32>
    %31 = arith.mulf %30, %17 : vector<32x256xf32>
    %cst_16 = arith.constant 0.000000e+00 : f32
    %32 = vector.broadcast %cst_16 : f32 to vector<32x256xf32>
    %33 = arith.subf %32, %11 : vector<32x256xf32>
    %34 = arith.mulf %33, %11 : vector<32x256xf32>
    %35 = math.exp %34 : vector<32x256xf32>
    %36 = arith.mulf %31, %35 : vector<32x256xf32>
    %cst_17 = arith.constant 1.000000e+00 : f32
    %37 = vector.broadcast %cst_17 : f32 to vector<32x256xf32>
    %38 = arith.subf %37, %36 : vector<32x256xf32>
    %cst_18 = arith.constant 0.000000e+00 : f32
    %39 = vector.broadcast %cst_18 : f32 to vector<32x256xf32>
    %40 = arith.cmpf oge, %10, %39 : vector<32x256xf32>
    %cst_19 = arith.constant 0.000000e+00 : f32
    %41 = vector.broadcast %cst_19 : f32 to vector<32x256xf32>
    %42 = arith.subf %41, %38 : vector<32x256xf32>
    %43 = arith.select %40, %38, %42 : vector<32x256xi1>, vector<32x256xf32>
    %cst_20 = arith.constant 1.000000e+00 : f32
    %44 = vector.broadcast %cst_20 : f32 to vector<32x256xf32>
    %45 = arith.addf %44, %43 : vector<32x256xf32>
    %46 = arith.mulf %8, %45 : vector<32x256xf32>
    %c0_21 = arith.constant 0 : index
    %c0_22 = arith.constant 0 : index
    %47 = vector.load %arg5[%c0_21, %c0_22] : memref<4x32xf32, #tpu.memory_space<vmem>>, vector<4x32xf32>
    %cst_23 = arith.constant dense<0.000000e+00> : vector<4x256xf32>
    %48 = tpu.matmul %47, %46, %cst_23 {dimension_numbers = #tpu.dot_dimension_numbers<[1], [0], [0], [1], [0, 0, 1, 1], [], []>} : vector<4x32xf32>, vector<32x256xf32>, vector<4x256xf32> -> vector<4x256xf32>
    %c0_24 = arith.constant 0 : index
    %c0_25 = arith.constant 0 : index
    %49 = vector.load %arg6[%c0_24, %c0_25] : memref<4x1xf32, #tpu.memory_space<vmem>>, vector<4x1xf32>
    %50 = vector.broadcast %49 : vector<4x1xf32> to vector<4x256xf32>
    %51 = arith.addf %48, %50 : vector<4x256xf32>
    %c0_26 = arith.constant 0 : index
    %c0_27 = arith.constant 0 : index
    %c0_28 = arith.constant 0 : index
    %52 = vector.load %arg7[%c0_26, %c0_27, %c0_28] : memref<1x4x256xf32, #tpu.memory_space<vmem>>, vector<1x4x256xf32>
    %53 = vector.shape_cast %52 : vector<1x4x256xf32> to vector<4x256xf32>
    %54 = vector.shape_cast %51 : vector<4x256xf32> to vector<1x4x256xf32>
    tpu.vector_store %arg7[%c0_26, %c0_27, %c0_28], %54 {strides = array<i32>} : memref<1x4x256xf32, #tpu.memory_space<vmem>>, vector<1x4x256xf32>,
    return
  }
  func.func @transform_0(%arg0: i32, %arg1: i32) -> (i32, i32, i32) {
    %c0_i32 = arith.constant 0 : i32
    %c0_i32_0 = arith.constant 0 : i32
    return %arg0, %c0_i32, %arg1 : i32, i32, i32
  }
  func.func @transform_1(%arg0: i32, %arg1: i32) -> (i32, i32) {
    %c0_i32 = arith.constant 0 : i32
    %c0_i32_0 = arith.constant 0 : i32
    %c0_i32_1 = arith.constant 0 : i32
    return %c0_i32, %c0_i32_0 : i32, i32
  }
  func.func @transform_2(%arg0: i32, %arg1: i32) -> (i32, i32) {
    %c0_i32 = arith.constant 0 : i32
    %c0_i32_0 = arith.constant 0 : i32
    %c0_i32_1 = arith.constant 0 : i32
    return %c0_i32, %c0_i32_0 : i32, i32
  }
  func.func @transform_3(%arg0: i32, %arg1: i32) -> (i32, i32) {
    %c0_i32 = arith.constant 0 : i32
    %c0_i32_0 = arith.constant 0 : i32
    %c0_i32_1 = arith.constant 0 : i32
    return %c0_i32, %c0_i32_0 : i32, i32
  }
  func.func @transform_4(%arg0: i32, %arg1: i32) -> (i32, i32) {
    %c0_i32 = arith.constant 0 : i32
    %c0_i32_0 = arith.constant 0 : i32
    %c0_i32_1 = arith.constant 0 : i32
    return %c0_i32, %c0_i32_0 : i32, i32
  }
  func.func @transform_5(%arg0: i32, %arg1: i32) -> (i32, i32, i32) {
    %c0_i32 = arith.constant 0 : i32
    %c0_i32_0 = arith.constant 0 : i32
    return %arg0, %c0_i32, %arg1 : i32, i32, i32
  }
}

</mosaic_0001>

<bundles_post_ra>
// kernel: conv_mlp_forward.1
= control target key start
LH: loop header
LB: loop body
LE: loop exit
PB: predicated region body
PF: predicated region fallthrough
CT: control target
= control target key end

     0   :  { %s929_s18 = smov 0   ;;  %s931_s19 = smov 0   ;;  %s1114_s0 = inlined_call_operand.vmem [shape: f32[2,4,256], index: 0, kind: input, shape index: {}]   ;;  %s1115_s1 = inlined_call_operand.vmem [shape: f32[32,4], index: 1, kind: input, shape index: {}]   ;;  %s1116_s2 = inlined_call_operand.vmem [shape: f32[32,1], index: 2, kind: input, shape index: {}]   ;;  %s1117_s3 = inlined_call_operand.vmem [shape: f32[4,32], index: 3, kind: input, shape index: {}]   ;;  %s1118_s4 = inlined_call_operand.vmem [shape: f32[4,1], index: 4, kind: input, shape index: {}]   ;;  %s1119_s5 = inlined_call_operand.vmem [shape: f32[2,4,256], index: 5, kind: output, shape index: {}]  }
   0x1   :  { %s933_s20 = smov 0  }
   0x2 LB: > { %s27_s21 = sadd.s32 1, %s891_s19  ;;  %p796_p0 = scmp.ge.s32.totalorder %s895_s20, 1  ;;  %s895_s20 = sphi %s933_s20, %s15_s20   ;;  %s891_s19 = sphi %s931_s19, %s1121_s19   ;;  %s887_s18 = sphi %s929_s18, %s1120_s18  }
   0x3   : > { %p29_p1 = scmp.ge.s32.totalorder %s27_s21, 2  ;;  %p208_p2 = scmp.lt.s32.totalorder %s895_s20, 3 }
   0x5   : > { %s1123_s21 = smov (%p29_p1, %s27_s21), 0  ;;  %p209_p3 = pnand %p796_p0, %p208_p2 }
   0x6   : > { %p245_p4 = scmp.lt.s32.totalorder (!%p209_p3), %s887_s18, 1 }
   0x7   : > { %212 = sbr.rel (%p209_p3) target bundleno = 489 (0x1e9), region = 40 }
   0xc   : > { %v897_v0 = vmov 0.0   ;;  %v270_v1 = vld [vmem:[%s1116_s2 + $0x8] sm:$0xff]  ;;  %s1125_s18 = smov (!%p245_p4, %s887_s18), 1  ;;  %v898_v2 = vmov 0   ;;  %v272_v3 = vld [vmem:[%s1116_s2 + $0x18] sm:$0xff]  ;;  %v269_v4 = vld [vmem:[%s1116_s2] sm:$0xff] }
   0xd   : > { %377 = vmatprep.mubr.f32.mxu0 %v897_v0  ;;  %693 = vmatprep.mubr.f32.mxu1 %v897_v0  ;;  %s810_s26 = sshll.u32 %s1125_s18, 3  ;;  %v271_v5 = vld [vmem:[%s1116_s2 + $0x10] sm:$0xff]  ;;  %vm308_vm0 = vcmask 1043456   ;;  %v265_v8 = vld [vmem:[%s1115_s1] sm:$0xff]  ;;  %vm295_vm1 = vcmask 31744   ;;  %v266_v10 = vld [vmem:[%s1115_s1 + $0x8] sm:$0xff] }
   0xe   : > { %839 = vset.pattern.permute.xlu1 %v898_v2  ;;  %838 = vset.pattern.permute.xlu0 %v898_v2  ;;  %s252_s8 = scalar_lea.vmem %s1114_s0, %s810_s26  ;;  %v619_v9 = vld [vmem:[%s1118_s4] sm:$0xf]  ;;  %v267_v11 = vld [vmem:[%s1115_s1 + $0x10] sm:$0xff]  ;;  %v268_v12 = vld [vmem:[%s1115_s1 + $0x18] sm:$0xff]  ;;  %vm625_vm10 = vcmask 261120   ;;  %s262_s28 = scalar_lea.vmem %s1119_s5, %s810_s26 }
   0xf   : > { %280 = vperm.xlu1 %839, %v270_v1   ;;  %290 = vperm.xlu0 %838, %v272_v3   ;;  %v264_v6 = vld [vmem:[%s252_s8] sm:$0xff] }
  0x10   : > { %v294_v7 = vcombine.high %v264_v6, %v264_v6 }
  0x12   : > { %801 = vmatprep.subr.msk.mxu0 %vm308_vm0, %v294_v7 }
  0x13   : > { %275 = vperm.xlu1 %839, %v269_v4   ;;  %285 = vperm.xlu0 %838, %v271_v5  }
  0x14   : > { %802 = vmatpush1.msk.msra.mxu0 %vm308_vm0, %v264_v6 }
  0x15   : > { %803 = vmatmul.mubr.msk.f32.vlgmr.msra.gmra.mxu0 %vm295_vm1, %v265_v8 }
  0x16   : > { %383 = vmatprep.mubr.f32.mxu0 %v897_v0 }
  0x17   : > { %622 = vperm.xlu0 %838, %v619_v9  }
  0x19   : > { %804 = vmatmul.mubr.msk.f32.gmra.mxu0 %vm295_vm1, %v266_v10 }
  0x1a   : > { %389 = vmatprep.mubr.f32.mxu0 %v897_v0 }
  0x1d   : > { %805 = vmatmul.mubr.msk.f32.gmra.mxu0 %vm295_vm1, %v267_v11 }
  0x1e   : > { %395 = vmatprep.mubr.f32.mxu0 %v897_v0 }
  0x21   : > { %806 = vmatmul.mubr.msk.f32.gmra.mxu0 %vm295_vm1, %v268_v12 }
  0x8a   : > { %v281_v13 = vpop.permute.xlu1 %280  ;;  %v291_v20 = vpop.permute.xlu0 %290 }
  0x8e   : > { %v276_v14 = vpop.permute.xlu1 %275  ;;  %v286_v35 = vpop.permute.xlu0 %285 }
  0xd5   : > { %v379_v15 = vpop.f32.mrf.mxu0 }
  0xd6   : > { %v982_v16 = vadd.f32 %v379_v15, %v276_v14 }
  0xd7   : > { %v381_v17 = vpop.f32.mrf.mxu0 }
  0xd8   : > { %v985_v18 = vmul.f32 0.70710677, %v982_v16  ;;  %v987_v19 = vadd.f32 %v381_v17, %v276_v14 }
  0xd9   : > { %v385_v21 = vpop.f32.mrf.mxu0 }
  0xda   : > { %v418_v22 = vand.u32 2147483647, %v985_v18  ;;  %v991_v23 = vmul.f32 0.70710677, %v987_v19  ;;  %v993_v24 = vadd.f32 %v385_v21, %v281_v13  ;;  %vm578_vm9 = vcmp.ge.f32.partialorder %v985_v18, 0.0 }
  0xdb   : > { %v387_v25 = vpop.f32.mrf.mxu0 }
  0xdc   : > { %v426_v26 = vmul.f32 0.3275911, %v418_v22  ;;  %v419_v27 = vand.u32 2147483647, %v991_v23  ;;  %v997_v28 = vmul.f32 0.70710677, %v993_v24  ;;  %v999_v29 = vadd.f32 %v387_v25, %v281_v13 }
  0xdd   : > { %v391_v30 = vpop.f32.mrf.mxu0  ;;  %v530_v0 = vsub.f32 0.0, %v418_v22  ;;  %vm579_vm2 = vcmp.ge.f32.partialorder %v991_v23, 0.0 }
  0xde   : > { %v434_v31 = vadd.f32 1.0, %v426_v26  ;;  %v427_v32 = vmul.f32 0.3275911, %v419_v27  ;;  %v420_v33 = vand.u32 2147483647, %v997_v28  ;;  %v1006_v41 = vadd.f32 %v391_v30, %v286_v35 }
  0xdf   : > { %v1003_v34 = vmul.f32 0.70710677, %v999_v29  ;;  %v393_v36 = vpop.f32.mrf.mxu0  ;;  %v531_v3 = vsub.f32 0.0, %v419_v27  ;;  %v538_v10 = vmul.f32 %v530_v0, %v418_v22  ;;  %vm580_vm8 = vcmp.ge.f32.partialorder %v997_v28, 0.0 }
  0xe0   : > { %841 = vrcp.f32 %v434_v31  ;;  %v435_v37 = vadd.f32 1.0, %v427_v32  ;;  %v428_v38 = vmul.f32 0.3275911, %v420_v33  ;;  %v1008_v42 = vadd.f32 %v393_v36, %v286_v35 }
  0xe1   : > { %v421_v39 = vand.u32 2147483647, %v1003_v34  ;;  %v397_v40 = vpop.f32.mrf.mxu0  ;;  %v1011_v45 = vmul.f32 0.70710677, %v1006_v41  ;;  %v532_v8 = vsub.f32 0.0, %v420_v33  ;;  %v539_v14 = vmul.f32 %v531_v3, %v419_v27 }
  0xe2   : > { %843 = vrcp.f32 %v435_v37  ;;  %v436_v43 = vadd.f32 1.0, %v428_v38  ;;  %v1015_v49 = vmul.f32 0.70710677, %v1008_v42  ;;  %v1017_v50 = vadd.f32 %v397_v40, %v291_v20 }
  0xe3   : > { %v429_v44 = vmul.f32 0.3275911, %v421_v39  ;;  %v399_v46 = vpop.f32.mrf.mxu0  ;;  %v422_v48 = vand.u32 2147483647, %v1011_v45  ;;  %v533_v15 = vsub.f32 0.0, %v421_v39  ;;  %v540_v30 = vmul.f32 %v532_v8, %v420_v33 }
  0xe4   : > { %845 = vrcp.f32 %v436_v43  ;;  %v1019_v51 = vadd.f32 %v399_v46, %v291_v20  ;;  %v423_v53 = vand.u32 2147483647, %v1015_v49  ;;  %v1023_v54 = vmul.f32 0.70710677, %v1017_v50 }
  0xe5   : > { %v437_v47 = vadd.f32 1.0, %v429_v44  ;;  %v430_v52 = vmul.f32 0.3275911, %v422_v48  ;;  %v534_v11 = vsub.f32 0.0, %v422_v48  ;;  %v546_v22 = vmul.f32 1.442695, %v538_v10 }
  0xe6   : > { %v1026_v56 = vmul.f32 0.70710677, %v1019_v51  ;;  %v431_v57 = vmul.f32 0.3275911, %v423_v53  ;;  %v424_v58 = vand.u32 2147483647, %v1023_v54  ;;  %v541_v38 = vmul.f32 %v533_v15, %v421_v39 }
  0xe7   : > { %847 = vrcp.f32 %v437_v47  ;;  %v438_v55 = vadd.f32 1.0, %v430_v52  ;;  %v535_v20 = vsub.f32 0.0, %v423_v53  ;;  %v542_v35 = vmul.f32 %v534_v11, %v422_v48 }
  0xe8   : > { %v425_v59 = vand.u32 2147483647, %v1026_v56  ;;  %v439_v61 = vadd.f32 1.0, %v431_v57  ;;  %v432_v62 = vmul.f32 0.3275911, %v424_v58  ;;  %v536_v31 = vsub.f32 0.0, %v424_v58 }
  0xe9   : > { %849 = vrcp.f32 %v438_v55  ;;  %v548_v27 = vmul.f32 1.442695, %v539_v14  ;;  %v543_v44 = vmul.f32 %v535_v20, %v423_v53  ;;  %v550_v55 = vmul.f32 1.442695, %v540_v30 }
  0xea   : > { %v433_v63 = vmul.f32 0.3275911, %v425_v59  ;;  %851 = vrcp.f32 %v439_v61  ;;  %v440_v1 = vadd.f32 1.0, %v432_v62  ;;  %v537_v46 = vsub.f32 0.0, %v425_v59 }
  0xeb   : > { %v544_v57 = vmul.f32 %v536_v31, %v424_v58  ;;  %v554_v48 = vmul.f32 1.442695, %v542_v35  ;;  %v552_v0 = vmul.f32 1.442695, %v541_v38  ;;  %v556_v3 = vmul.f32 1.442695, %v543_v44 }
  0xec   : > { %v441_v4 = vadd.f32 1.0, %v433_v63  ;;  %853 = vrcp.f32 %v440_v1  ;;  %vm582_vm3 = vcmp.ge.f32.partialorder %v1011_v45, 0.0  ;;  %vm583_vm4 = vcmp.ge.f32.partialorder %v1015_v49, 0.0 }
  0xed   : > { %v1030_v60 = vpop.eup %841  ;;  %vm584_vm5 = vcmp.ge.f32.partialorder %v1023_v54, 0.0  ;;  %vm581_vm6 = vcmp.ge.f32.partialorder %v1003_v34, 0.0  ;;  %vm585_vm7 = vcmp.ge.f32.partialorder %v1026_v56, 0.0  ;;  %v409_v49 = vmul.f32 0.5, %v1019_v51 }
  0xee   : > { %v458_v5 = vmul.f32 1.0614054, %v1030_v60  ;;  %855 = vrcp.f32 %v441_v4  ;;  %v545_v4 = vmul.f32 %v537_v46, %v425_v59  ;;  %v407_v56 = vmul.f32 0.5, %v1008_v42 }
  0xef   : > { %v1032_v2 = vpop.eup %843  ;;  %857 = vpow2.f32 %v546_v22 }
  0xf0   : > { %v459_v6 = vmul.f32 1.0614054, %v1032_v2  ;;  %v466_v9 = vadd.f32 -1.4531521, %v458_v5  ;;  %859 = vpow2.f32 %v548_v27 }
  0xf1   : > { %v1036_v7 = vpop.eup %845  ;;  %861 = vpow2.f32 %v550_v55 }
  0xf2   : > { %v460_v12 = vmul.f32 1.0614054, %v1036_v7  ;;  %v467_v13 = vadd.f32 -1.4531521, %v459_v6  ;;  %v474_v26 = vmul.f32 %v1030_v60, %v466_v9  ;;  %v558_v6 = vmul.f32 1.442695, %v544_v57 }
  0xf3   : > { %863 = vpow2.f32 %v554_v48 }
  0xf4   : > { %v1039_v17 = vpop.eup %847  ;;  %v468_v21 = vadd.f32 -1.4531521, %v460_v12  ;;  %v475_v25 = vmul.f32 %v1032_v2, %v467_v13  ;;  %v482_v52 = vadd.f32 1.4214138, %v474_v26  ;;  %865 = vpow2.f32 %v552_v0 }
  0xf5   : > { %v461_v32 = vmul.f32 1.0614054, %v1039_v17  ;;  %867 = vpow2.f32 %v556_v3 }
  0xf6   : > { %v476_v36 = vmul.f32 %v1036_v7, %v468_v21  ;;  %v483_v37 = vadd.f32 1.4214138, %v475_v25  ;;  %v1045_v43 = vpop.eup %849  ;;  %v490_v5 = vmul.f32 %v1030_v60, %v482_v52  ;;  %v560_v21 = vmul.f32 1.442695, %v545_v4 }
  0xf7   : > { %v469_v40 = vadd.f32 -1.4531521, %v461_v32  ;;  %v462_v33 = vmul.f32 1.0614054, %v1045_v43  ;;  %v1051_v39 = vpop.eup %851  ;;  %869 = vpow2.f32 %v558_v6 }
  0xf8   : > { %v484_v47 = vadd.f32 1.4214138, %v476_v36  ;;  %v491_v63 = vmul.f32 %v1032_v2, %v483_v37  ;;  %v463_v58 = vmul.f32 1.0614054, %v1051_v39  ;;  %v498_v26 = vadd.f32 -0.28449672, %v490_v5 }
  0xf9   : > { %v477_v61 = vmul.f32 %v1039_v17, %v469_v40  ;;  %v470_v53 = vadd.f32 -1.4531521, %v462_v33  ;;  %v1057_v10 = vpop.eup %853  ;;  %871 = vpow2.f32 %v560_v21 }
  0xfa   : > { %v492_v62 = vmul.f32 %v1036_v7, %v484_v47  ;;  %v471_v11 = vadd.f32 -1.4531521, %v463_v58  ;;  %v499_v13 = vadd.f32 -0.28449672, %v491_v63  ;;  %v464_v14 = vmul.f32 1.0614054, %v1057_v10 }
  0xfb   : > { %v485_v1 = vadd.f32 1.4214138, %v477_v61  ;;  %v478_v8 = vmul.f32 %v1045_v43, %v470_v53  ;;  %v856_v20 = vpop.eup %855  ;;  %v506_v46 = vmul.f32 %v1030_v60, %v498_v26 }
  0xfc   : > { %v500_v12 = vadd.f32 -0.28449672, %v492_v62  ;;  %v479_v25 = vmul.f32 %v1051_v39, %v471_v11  ;;  %v465_v30 = vmul.f32 1.0614054, %v856_v20  ;;  %v472_v31 = vadd.f32 -1.4531521, %v464_v14  ;;  %v858_v48 = vpop.eup %857 }
  0xfd   : > { %v493_v9 = vmul.f32 %v1039_v17, %v485_v1  ;;  %v486_v59 = vadd.f32 1.4214138, %v478_v8  ;;  %v507_v40 = vmul.f32 %v1032_v2, %v499_v13  ;;  %v860_v1 = vpop.eup %859  ;;  %v514_v4 = vadd.f32 0.2548296, %v506_v46 }
  0xfe   : > { %v487_v35 = vadd.f32 1.4214138, %v479_v25  ;;  %v508_v36 = vmul.f32 %v1036_v7, %v500_v12  ;;  %v473_v37 = vadd.f32 -1.4531521, %v465_v30  ;;  %v480_v27 = vmul.f32 %v1057_v10, %v472_v31 }
  0xff   : > { %v501_v15 = vadd.f32 -0.28449672, %v493_v9  ;;  %v494_v32 = vmul.f32 %v1045_v43, %v486_v59  ;;  %v515_v53 = vadd.f32 0.2548296, %v507_v40  ;;  %v862_v9 = vpop.eup %861  ;;  %v522_v30 = vmul.f32 %v1030_v60, %v514_v4 }
 0x100   : > { %v495_v44 = vmul.f32 %v1051_v39, %v487_v35  ;;  %v481_v47 = vmul.f32 %v856_v20, %v473_v37  ;;  %v488_v52 = vadd.f32 1.4214138, %v480_v27  ;;  %v516_v61 = vadd.f32 0.2548296, %v508_v36  ;;  %v864_v13 = vpop.eup %863 }
 0x101   : > { %v509_v22 = vmul.f32 %v1039_v17, %v501_v15  ;;  %v502_v38 = vadd.f32 -0.28449672, %v494_v32  ;;  %v523_v15 = vmul.f32 %v1032_v2, %v515_v53  ;;  %v866_v21 = vpop.eup %865  ;;  %v562_v2 = vmul.f32 %v858_v48, %v522_v30 }
 0x102   : > { %v503_v33 = vadd.f32 -0.28449672, %v495_v44  ;;  %v489_v62 = vadd.f32 1.4214138, %v481_v47  ;;  %v496_v63 = vmul.f32 %v1057_v10, %v488_v52  ;;  %v524_v12 = vmul.f32 %v1036_v7, %v516_v61  ;;  %v868_v31 = vpop.eup %867 }
 0x103   : > { %v510_v55 = vmul.f32 %v1045_v43, %v502_v38  ;;  %v517_v57 = vadd.f32 0.2548296, %v509_v22  ;;  %v563_v27 = vmul.f32 %v860_v1, %v523_v15  ;;  %v403_v30 = vmul.f32 0.5, %v987_v19 }
 0x104   : > { %v511_v3 = vmul.f32 %v1051_v39, %v503_v33  ;;  %v497_v58 = vmul.f32 %v856_v20, %v489_v62  ;;  %v504_v5 = vadd.f32 -0.28449672, %v496_v63  ;;  %v564_v35 = vmul.f32 %v862_v9, %v524_v12  ;;  %v870_v36 = vpop.eup %869 }
 0x105   : > { %v518_v0 = vadd.f32 0.2548296, %v510_v55  ;;  %v525_v8 = vmul.f32 %v1039_v17, %v517_v57  ;;  %v571_v33 = vsub.f32 1.0, %v563_v27  ;;  %v570_v62 = vsub.f32 1.0, %v562_v2 }
 0x106   : > { %v519_v11 = vadd.f32 0.2548296, %v511_v3  ;;  %v505_v14 = vadd.f32 -0.28449672, %v497_v58  ;;  %v512_v59 = vmul.f32 %v1057_v10, %v504_v5  ;;  %v872_v44 = vpop.eup %871  ;;  %v572_v52 = vsub.f32 1.0, %v564_v35 }
 0x107   : > { %v526_v6 = vmul.f32 %v1045_v43, %v518_v0  ;;  %v565_v17 = vmul.f32 %v866_v21, %v525_v8  ;;  %v587_v3 = vsub.f32 0.0, %v571_v33  ;;  %v586_v58 = vsub.f32 0.0, %v570_v62 }
 0x108   : > { %v527_v25 = vmul.f32 %v1051_v39, %v519_v11  ;;  %v513_v43 = vmul.f32 %v856_v20, %v505_v14  ;;  %v520_v32 = vadd.f32 0.2548296, %v512_v59  ;;  %v408_v11 = vmul.f32 0.5, %v1017_v50 }
 0x109   : > { %v566_v26 = vmul.f32 %v864_v13, %v526_v6  ;;  %v573_v47 = vsub.f32 1.0, %v565_v17  ;;  %v595_v34 = vsel %vm579_vm2, %v571_v33, %v587_v3  ;;  %v594_v14 = vsel %vm578_vm9, %v570_v62, %v586_v58 }
 0x10a   : > { %v567_v22 = vmul.f32 %v868_v31, %v527_v25  ;;  %v521_v7 = vadd.f32 0.2548296, %v513_v43  ;;  %v528_v37 = vmul.f32 %v1057_v10, %v520_v32  ;;  %v406_v59 = vmul.f32 0.5, %v1006_v41  ;;  %v623_v32 = vpop.permute.xlu0 %622 }
 0x10b   : > { %v574_v40 = vsub.f32 1.0, %v566_v26  ;;  %v589_v10 = vsub.f32 0.0, %v573_v47  ;;  %v405_v21 = vmul.f32 0.5, %v999_v29  ;;  %v603_v18 = vadd.f32 1.0, %v595_v34 }
 0x10c   : > { %v575_v38 = vsub.f32 1.0, %v567_v22  ;;  %v529_v46 = vmul.f32 %v856_v20, %v521_v7  ;;  %v568_v39 = vmul.f32 %v870_v36, %v528_v37  ;;  %v588_v20 = vsub.f32 0.0, %v572_v52 }
 0x10d   : > { %v590_v61 = vsub.f32 0.0, %v574_v40  ;;  %v597_v45 = vsel %vm581_vm6, %v573_v47, %v589_v10  ;;  %v404_v50 = vmul.f32 0.5, %v993_v24  ;;  %v602_v23 = vadd.f32 1.0, %v594_v14  ;;  %v618_v24 = vld [vmem:[%s1117_s3] sm:$0xf] }
 0x10e   : > { %v569_v60 = vmul.f32 %v872_v44, %v529_v46  ;;  %v576_v55 = vsub.f32 1.0, %v568_v39  ;;  %v591_v57 = vsub.f32 0.0, %v575_v38  ;;  %v596_v9 = vsel %vm580_vm8, %v572_v52, %v588_v20 }
 0x10f   : > { %v598_v4 = vsel %vm582_vm3, %v574_v40, %v590_v61  ;;  %v605_v28 = vadd.f32 1.0, %v597_v45  ;;  %v604_v51 = vadd.f32 1.0, %v596_v9  ;;  %v402_v31 = vmul.f32 0.5, %v982_v16 }
 0x110   : > { %v577_v63 = vsub.f32 1.0, %v569_v60  ;;  %v592_v0 = vsub.f32 0.0, %v576_v55  ;;  %v599_v1 = vsel %vm583_vm4, %v575_v38, %v591_v57  ;;  %v606_v12 = vadd.f32 1.0, %v598_v4 }
 0x111   : > { %v607_v54 = vadd.f32 1.0, %v599_v1  ;;  %v613_v42 = vmul.f32 %v605_v28, %v405_v21  ;;  %v612_v41 = vmul.f32 %v604_v51, %v404_v50  ;;  %v611_v43 = vmul.f32 %v603_v18, %v403_v30 }
 0x112   : > { %v593_v48 = vsub.f32 0.0, %v577_v63  ;;  %v600_v53 = vsel %vm584_vm5, %v576_v55, %v592_v0  ;;  %v614_v26 = vmul.f32 %v606_v12, %v406_v59  ;;  %v610_v29 = vmul.f32 %v602_v23, %v402_v31 }
 0x113   : > { %v608_v6 = vadd.f32 1.0, %v600_v53  ;;  %v615_v25 = vmul.f32 %v607_v54, %v407_v56 }
 0x114   : > { %v601_v5 = vsel %vm585_vm7, %v577_v63, %v593_v48 }
 0x115   : > { %v609_v8 = vadd.f32 1.0, %v601_v5  ;;  %v616_v15 = vmul.f32 %v608_v6, %v408_v11 }
 0x117   : > { %v617_v13 = vmul.f32 %v609_v8, %v409_v49 }
 0x119   : > { %653 = vmatprep.subr.mxu1 %v617_v13 }
 0x11a   : > { %654 = vmatpush1.msra.mxu1 %v616_v15 }
 0x11b   : > { %655 = vmatprep.subr.mxu1 %v615_v25 }
 0x11c   : > { %656 = vmatpush1.msra.mxu1 %v614_v26 }
 0x11d   : > { %657 = vmatprep.subr.mxu1 %v613_v42 }
 0x11e   : > { %658 = vmatpush1.msra.mxu1 %v612_v41 }
 0x11f   : > { %659 = vmatprep.subr.mxu1 %v611_v43 }
 0x120   : > { %660 = vmatpush1.msra.mxu1 %v610_v29 }
 0x121   : > { %807 = vmatmul.mubr.msk.f32.vlgmr.msra.gmra.mxu1 %vm625_vm10, %v618_v24 }
 0x1e1   : > { %v695_v19 = vpop.f32.mrf.mxu1 }
 0x1e2   : > { %v696_v22 = vadd.f32 %v695_v19, %v623_v32 }
 0x1e3   : > { %v697_v17 = vpop.f32.mrf.mxu1 }
 0x1e4   : > { %v698_v16 = vadd.f32 %v697_v17, %v623_v32 }
 0x1e6   : > { %v702_v35 = vcombine.low %v696_v22, %v698_v16 }
 0x1e8   : > { %704 = vst [vmem:[%s262_s28] sm:$0xff] %v702_v35 }
 0x1e9 PF: > { %s15_s20 = sadd.s32 1, %s895_s20   ;;  %s1120_s18 = smov %s891_s19 }
 0x1ea   : > { %p12_p5 = scmp.ge.s32.totalorder %s15_s20, 4   ;;  %s1121_s19 = smov %s1123_s21 }
 0x1ec   :  { %14 = sbr.rel (!%p12_p5) target bundleno = 2 (0x2), region = 70 }

</bundles_post_ra>
